<compile_context>
chip_gen: v5e
topology: v5e:2x2
jax: 0.10.0
libtpu: 0.0.40
codegen_flags: <defaults>
</compile_context>

<pallas_src>
import jax
import jax.numpy as jnp
from jax.experimental import pallas as pl
from jax.experimental.pallas import tpu as pltpu

_LANE = 128
_SUBLANE = 8
_MAX_TILE_BYTES = 4 * 1024 * 1024   # per-block byte budget for the x block
_VMEM_LIMIT = 48 * 1024 * 1024      # in+out double buffers (4 x 4 MiB) + headroom


def _round_up(a: int, b: int) -> int:
    return ((a + b - 1) // b) * b


def _stochastic_depth_kernel(scale_ref, x_ref, o_ref):
    # scale_ref: (tile_n, 1) float32, per-sample 0 or 1/keep_prob
    # x_ref / o_ref: (tile_n, tile_f) in x.dtype.  One vmul per vreg — HBM bound,
    # nothing in the body is worth micro-optimizing.
    o_ref[...] = x_ref[...] * scale_ref[...].astype(x_ref.dtype)


def stochastic_depth(x, *, drop_prob: float = 0.1, training: bool = True,
                     key=None, seed: int = 0):
    """JAX/Pallas equivalent of StochasticDepth.forward (x is NCHW or any rank >= 1).

    Pass a fresh `key` (jax.random key) per training step; `seed` is only a fallback.
    """
    if drop_prob == 0.0 or not training:
        return x
    if drop_prob >= 1.0:
        # keep_prob == 0: every sample dropped; avoid 0 * inf = NaN of the naive formula.
        return jnp.zeros_like(x)

    keep_prob = 1.0 - drop_prob
    n = x.shape[0]
    f = 1
    for d in x.shape[1:]:
        f *= d
    x2d = x.reshape(n, f)  # free metadata reshape (contiguous)

    # Per-sample Bernoulli(keep_prob) mask, matching torch: floor(keep_prob + U[0,1)),
    # pre-scaled by 1/keep_prob so the kernel is a single multiply.
    if key is None:
        key = jax.random.PRNGKey(seed)
    u = jax.random.uniform(key, (n,), dtype=jnp.float32)
    scale2d = (jnp.floor(jnp.float32(keep_prob) + u)
               * jnp.float32(1.0 / keep_prob)).reshape(n, 1)

    # --- tiling: cdiv (ragged) grid, no input padding, no output slicing ---
    itemsize = jnp.dtype(x.dtype).itemsize
    base_n = n if n < _SUBLANE else _SUBLANE

    # F: full-row blocks when they fit the byte budget (contiguous DMA runs);
    # otherwise 128-multiple chunks with a ragged last block.
    if base_n * f * itemsize <= _MAX_TILE_BYTES:
        tile_f = f                                   # "equal full dim" satisfies (8,128) rule
    else:
        tile_f = max(_LANE,
                     (_MAX_TILE_BYTES // (base_n * itemsize)) // _LANE * _LANE)
        # tile_f < f here and is a multiple of 128; edge block is handled by cdiv grid.

    # N: largest multiple of 8 within the byte budget (no exact-divisor search).
    if n < _SUBLANE:
        tile_n = n                                   # full-dim row block, no padding
    else:
        rows_budget = max(
            _SUBLANE,
            (_MAX_TILE_BYTES // max(1, tile_f * itemsize)) // _SUBLANE * _SUBLANE,
        )
        tile_n = min(rows_budget, (n // _SUBLANE) * _SUBLANE)
        if n >= 2 * _SUBLANE:
            # Keep at least 2 N-blocks so both v7x TensorCores (megacore) get work.
            tile_n = min(tile_n, _round_up(-(-n // 2), _SUBLANE))

    grid = (pl.cdiv(n, tile_n), pl.cdiv(f, tile_f))

    out2d = pl.pallas_call(
        _stochastic_depth_kernel,
        out_shape=jax.ShapeDtypeStruct((n, f), x.dtype),
        grid=grid,
        in_specs=[
            pl.BlockSpec((tile_n, 1), lambda i, j: (i, 0)),
            pl.BlockSpec((tile_n, tile_f), lambda i, j: (i, j)),
        ],
        out_specs=pl.BlockSpec((tile_n, tile_f), lambda i, j: (i, j)),
        compiler_params=pltpu.CompilerParams(
            dimension_semantics=("parallel", "parallel"),
            vmem_limit_bytes=_VMEM_LIMIT,
        ),
    )(scale2d, x2d)

    return out2d.reshape(x.shape)
    # TODO(synk): for workloads with drop_prob >= 0.3, skip the HBM read of dropped
    # rows via a scalar-prefetched mask + manual DMA (saves ~drop_prob/2 of HBM bytes).


def _check_samples(x, out, keep_prob):
    ok = out.shape == x.shape
    for b in range(x.shape[0]):
        kept = jnp.allclose(out[b], x[b] / keep_prob, rtol=1e-6, atol=1e-6)
        dropped = jnp.allclose(out[b], 0.0)
        ok = ok and bool(kept or dropped)
    return ok


if __name__ == "__main__":
    key = jax.random.PRNGKey(0)
    drop_prob = 0.1
    keep_prob = 1.0 - drop_prob

    # NCHW input, small shapes: batch=2, channels=4, spatial=16x16.
    x = jax.random.normal(key, (2, 4, 16, 16), dtype=jnp.float32)
    out = stochastic_depth(x, drop_prob=drop_prob, training=True, seed=0)
    out = jax.block_until_ready(out)
    ok = _check_samples(x, out, keep_prob)

    # Ragged shape (n not a multiple of 8, f not a multiple of 128) to exercise the
    # cdiv edge-block path: batch=10, channels=3, spatial=7x7.
    k2 = jax.random.PRNGKey(1)
    x2 = jax.random.normal(k2, (10, 3, 7, 7), dtype=jnp.float32)
    out2 = jax.block_until_ready(
        stochastic_depth(x2, drop_prob=drop_prob, training=True, seed=3))
    ok = ok and _check_samples(x2, out2, keep_prob)

    # Eval mode must be identity.
    ok = ok and bool(jnp.array_equal(
        stochastic_depth(x, drop_prob=drop_prob, training=False), x))
    # drop_prob == 1.0 must give zeros (no NaN).
    ok = ok and bool(jnp.array_equal(
        stochastic_depth(x, drop_prob=1.0, training=True), jnp.zeros_like(x)))

    if ok:
        print("KERNEL_OK")
    else:
        print("KERNEL_MISMATCH")
</pallas_src>

<mosaic_0001>
module attributes {stable_mosaic.version = 11 : i64} {
  func.func @_stochastic_depth_kernel(%arg0: i32, %arg1: i32, %arg2: memref<2x1xf32, #tpu.memory_space<vmem>>, %arg3: memref<2x1024xf32, #tpu.memory_space<vmem>>, %arg4: memref<2x1024xf32, #tpu.memory_space<vmem>>) attributes {dimension_semantics = [#tpu.dimension_semantics<parallel>, #tpu.dimension_semantics<parallel>], iteration_bounds = array<i64: 1, 1>, scalar_prefetch = 0 : i64, scratch_operands = 0 : i64, tpu.core_type = #tpu.core_type<tc>, window_params = [{transform_indices = @transform_0, window_bounds = array<i64: 2, 1>}, {transform_indices = @transform_1, window_bounds = array<i64: 2, 1024>}, {transform_indices = @transform_2, window_bounds = array<i64: 2, 1024>}]} {
    %c0 = arith.constant 0 : index
    %c0_0 = arith.constant 0 : index
    %0 = vector.load %arg3[%c0, %c0_0] : memref<2x1024xf32, #tpu.memory_space<vmem>>, vector<2x1024xf32>
    %c0_1 = arith.constant 0 : index
    %c0_2 = arith.constant 0 : index
    %1 = vector.load %arg2[%c0_1, %c0_2] : memref<2x1xf32, #tpu.memory_space<vmem>>, vector<2x1xf32>
    %2 = vector.broadcast %1 : vector<2x1xf32> to vector<2x1024xf32>
    %3 = arith.mulf %0, %2 : vector<2x1024xf32>
    %c0_3 = arith.constant 0 : index
    %c0_4 = arith.constant 0 : index
    %4 = vector.load %arg4[%c0_3, %c0_4] : memref<2x1024xf32, #tpu.memory_space<vmem>>, vector<2x1024xf32>
    tpu.vector_store %arg4[%c0_3, %c0_4], %3 {strides = array<i32>} : memref<2x1024xf32, #tpu.memory_space<vmem>>, vector<2x1024xf32>,
    return
  }
  func.func @transform_0(%arg0: i32, %arg1: i32) -> (i32, i32) {
    %c0_i32 = arith.constant 0 : i32
    %c0_i32_0 = arith.constant 0 : i32
    return %arg0, %c0_i32 : i32, i32
  }
  func.func @transform_1(%arg0: i32, %arg1: i32) -> (i32, i32) {
    %c0_i32 = arith.constant 0 : i32
    return %arg0, %arg1 : i32, i32
  }
  func.func @transform_2(%arg0: i32, %arg1: i32) -> (i32, i32) {
    %c0_i32 = arith.constant 0 : i32
    return %arg0, %arg1 : i32, i32
  }
}

</mosaic_0001>

<bundles_post_ra>
// kernel: tpu_custom_call.1
= control target key start
LH: loop header
LB: loop body
LE: loop exit
PB: predicated region body
PF: predicated region fallthrough
CT: control target
= control target key end

     0   :  { %7 = vsyncpa [#allocation3], 0  ;;  %s144_s0 = inlined_call_operand.vmem [shape: f32[2,1], index: 0, kind: input, shape index: {}]   ;;  %s145_s1 = inlined_call_operand.hbm [shape: f32[2,1024], index: 1, kind: input, shape index: {}]   ;;  %s146_s2 = inlined_call_operand.hbm [shape: f32[2,1024], index: 2, kind: output, shape index: {}]  }
   0x1   :  { %8 = vsyncpa [#allocation4], 0  ;;  %s16_s11 = sshll.u32 %s145_s1, 4  ;;  %s116_s12 = smov [#allocation2]   ;;  %s17_s11 = int_to_ptr.hbm [resolvable:$true] %s16_s11 }
   0x2   :  { %s18_s13 = sshll.u32 %s116_s12, 4  ;;  %s19_s13 = int_to_ptr.vmem [resolvable:$true] %s18_s13 }
   0x3   :  { %21 = dma.hbm_to_vmem [thread:$0]  %s17_s11, 256, %s19_s13, [#allocation3]  }
   0x4   :  { %112 = dma.done.wait [#allocation3], 256  }
   0x5   :  { %113 = vsyncadd [#allocation3], 4294967040  ;;  %v117_v0 = vmov 0   ;;  %v28_v1 = vld [vmem:[%s144_s0] sm:$0x3]  ;;  %v27_v7 = vld [vmem:[#allocation2 + $0x8] sm:$0xff] }
   0x6   :  { %63 = vset.pattern.permute.xlu0 %v117_v0  ;;  %v118_v2 = vmov 269488144   ;;  %v26_v6 = vld [vmem:[#allocation2] sm:$0xff]  ;;  %s119_s1 = smov [#allocation5]   ;;  %s49_s19 = sshll.u32 %s146_s2, 4  ;;  %s50_s19 = int_to_ptr.hbm [resolvable:$true] %s49_s19 }
   0x7   :  { %31 = vperm.xlu0 %63, %v28_v1   ;;  %v34_v3 = vunpack.c.l.s4 %v118_v2  ;;  %s47_s16 = sshll.u32 %s119_s1, 4  ;;  %s48_s16 = int_to_ptr.vmem [resolvable:$true] %s47_s16 }
   0x9   :  { %v35_v4 = vunpack.c.0.s8 %v34_v3 }
  0x79   :  { %v32_v5 = vpop.permute.xlu0 %31 }
  0x7a   :  { %v36_v8 = vperm.slane %v32_v5, %v35_v4 }
  0x7c   :  { %v38_v9 = vmul.f32 %v36_v8, %v26_v6  ;;  %v39_v10 = vmul.f32 %v36_v8, %v27_v7 }
  0x7e   :  { %40 = vst [vmem:[#allocation5] sm:$0xff] %v38_v9 }
  0x7f   :  { %41 = vst [vmem:[#allocation5 + $0x8] sm:$0xff] %v39_v10 }
  0x80   :  { %52 = dma.vmem_to_hbm [thread:$0]  %s48_s16, 256, %s50_s19, [#allocation4]  }
  0x81   :  { %114 = dma.done.wait [#allocation4], 256  }
  0x82   :  { %115 = vsyncadd [#allocation4], 4294967040 }
  0x83   :  { %57 = vsyncpa [#allocation3], 1 }
  0x84   :  { %58 = vsyncpa [#allocation4], 1 }

</bundles_post_ra>
